<compile_context>
chip_gen: v6e
topology: v6e:2x2x1
jax: 0.10.0
libtpu: 0.0.40
codegen_flags: <defaults>
</compile_context>

<pallas_src>
import math
import jax
import jax.numpy as jnp
from jax.experimental import pallas as pl
from jax.experimental.pallas import tpu as pltpu


def _ffn_kernel(x_ref, w1_ref, b1_ref, w2_ref, b2_ref, o_ref):
    # x_ref:  (tm, d_model)  bf16 tile of flattened tokens
    # w1_ref: (d_model, d_ff) bf16, resident (constant index_map)
    # b1_ref: (1, d_ff)       f32
    # w2_ref: (d_ff, d_model) bf16, resident
    # b2_ref: (1, d_model)    f32
    # o_ref:  (tm, d_model)   output dtype

    # First GEMM: bf16 inputs on the MXU, f32 accumulation.
    h = jnp.dot(x_ref[...], w1_ref[...], preferred_element_type=jnp.float32)
    h = h + b1_ref[...]

    # tanh-approx GELU — identical formula to the reference module:
    #   0.5 * x * (1 + tanh(sqrt(2/pi) * (x + 0.044715 * x^3)))
    # Done in f32 (VPU); tanh goes to the EUP slot (effectively free).
    g = jax.nn.gelu(h, approximate=True)

    # dropout: identity (eval mode).

    # Second GEMM: cast activation back to bf16 for the MXU, accumulate in f32.
    y = jnp.dot(g.astype(w2_ref.dtype), w2_ref[...],
                preferred_element_type=jnp.float32)
    y = y + b2_ref[...]
    o_ref[...] = y.astype(o_ref.dtype)


def _round_up(x, m):
    return (x + m - 1) // m * m


def positionwise_ffn(x, w1, b1, w2, b2, *, tm=256):
    """BERT FFN forward.

    x : (B, S, d_model)
    w1: (d_model, d_ff)   (transposed vs. torch Linear's (out, in) storage)
    b1: (d_ff,)
    w2: (d_ff, d_model)
    b2: (d_model,)
    """
    B, S, d_model = x.shape
    d_ff = w1.shape[1]
    M = B * S

    # Row tile: large enough to fill the MXU, but never larger than the
    # (16-aligned) token count.  Pad M up to the tile instead of asserting.
    tm = min(tm, _round_up(M, 16))
    M_pad = _round_up(M, tm)

    x2d = x.reshape(M, d_model)
    if M_pad != M:
        x2d = jnp.pad(x2d, ((0, M_pad - M), (0, 0)))

    # bf16 matmul inputs; biases stay f32 (added after f32 accumulation).
    x_bf = x2d.astype(jnp.bfloat16)
    w1_bf = w1.astype(jnp.bfloat16)
    w2_bf = w2.astype(jnp.bfloat16)
    b1_2d = b1.reshape(1, d_ff).astype(jnp.float32)
    b2_2d = b2.reshape(1, d_model).astype(jnp.float32)

    out_itemsize = jnp.dtype(x.dtype).itemsize

    # Explicit VMEM budget: bf16 weights (x2 buffers), double-buffered x/out
    # tiles, f32 (tm, d_ff) intermediates, biases — plus headroom; clamped to
    # stay well inside 128 MiB (v5e/v6e) and 64 MiB (v7x) physical VMEM.
    w_bytes = 2 * 2 * (d_model * d_ff + d_ff * d_model)
    io_bytes = 2 * tm * d_model * (2 + out_itemsize)
    bias_bytes = 2 * 4 * (d_ff + d_model)
    scratch_bytes = 2 * tm * d_ff * 4
    vmem_limit = int(min(
        max(1.5 * (w_bytes + io_bytes + bias_bytes + scratch_bytes) + (4 << 20),
            32 << 20),
        100 << 20))

    cost = pl.CostEstimate(
        flops=2 * 2 * M_pad * d_model * d_ff,          # two GEMMs
        transcendentals=M_pad * d_ff,                  # tanh in GELU
        bytes_accessed=(M_pad * d_model * 2            # x (bf16)
                        + (w1.size + w2.size) * 2      # weights (bf16)
                        + (b1.size + b2.size) * 4      # biases (f32)
                        + M_pad * d_model * out_itemsize),
    )

    out2d = pl.pallas_call(
        _ffn_kernel,
        out_shape=jax.ShapeDtypeStruct((M_pad, d_model), x.dtype),
        grid_spec=pltpu.PrefetchScalarGridSpec(
            num_scalar_prefetch=0,
            grid=(M_pad // tm,),
            in_specs=[
                pl.BlockSpec((tm, d_model), lambda i: (i, 0)),    # x tile
                pl.BlockSpec((d_model, d_ff), lambda i: (0, 0)),  # W1 (resident)
                pl.BlockSpec((1, d_ff), lambda i: (0, 0)),        # b1 (resident)
                pl.BlockSpec((d_ff, d_model), lambda i: (0, 0)),  # W2 (resident)
                pl.BlockSpec((1, d_model), lambda i: (0, 0)),     # b2 (resident)
            ],
            out_specs=pl.BlockSpec((tm, d_model), lambda i: (i, 0)),
        ),
        compiler_params=pltpu.CompilerParams(
            dimension_semantics=("parallel",),
            vmem_limit_bytes=vmem_limit,
        ),
        cost_estimate=cost,
    )(x_bf, w1_bf, b1_2d, w2_bf, b2_2d)

    return out2d[:M].reshape(B, S, d_model)


def _reference_f32(x, w1, b1, w2, b2):
    h = jnp.einsum("bsd,df->bsf", x, w1) + b1
    c = math.sqrt(2.0 / math.pi)
    g = 0.5 * h * (1.0 + jnp.tanh(c * (h + 0.044715 * h ** 3)))
    return jnp.einsum("bsf,fd->bsd", g, w2) + b2


def _reference_bf16_matched(x, w1, b1, w2, b2):
    # Same precision policy as the kernel: bf16 matmul inputs, f32 accumulation.
    h = jnp.einsum("bsd,df->bsf", x.astype(jnp.bfloat16), w1.astype(jnp.bfloat16),
                   preferred_element_type=jnp.float32) + b1
    g = jax.nn.gelu(h, approximate=True)
    y = jnp.einsum("bsf,fd->bsd", g.astype(jnp.bfloat16), w2.astype(jnp.bfloat16),
                   preferred_element_type=jnp.float32) + b2
    return y.astype(x.dtype)


if __name__ == "__main__":
    # Small shapes consistent with the module: batch=2, seq=8, d_model=32, d_ff=128
    B, S, d_model, d_ff = 2, 8, 32, 128

    key = jax.random.PRNGKey(0)
    kx, kw1, kb1, kw2, kb2 = jax.random.split(key, 5)

    x = jax.random.normal(kx, (B, S, d_model), dtype=jnp.float32)
    # torch Linear stores (out, in); we keep the transposed (in, out) layout
    # so the kernel does row-major x @ W.
    w1 = jax.random.normal(kw1, (d_model, d_ff), dtype=jnp.float32) * 0.02
    b1 = jax.random.normal(kb1, (d_ff,), dtype=jnp.float32) * 0.02
    w2 = jax.random.normal(kw2, (d_ff, d_model), dtype=jnp.float32) * 0.02
    b2 = jax.random.normal(kb2, (d_model,), dtype=jnp.float32) * 0.02

    out = positionwise_ffn(x, w1, b1, w2, b2)
    out = jax.block_until_ready(out)
    assert out.shape == (B, S, d_model)

    # Tight check against a precision-matched (bf16-input) reference.
    ref_bf = _reference_bf16_matched(x, w1, b1, w2, b2)
    assert jnp.allclose(out, ref_bf, atol=2e-3, rtol=2e-3), "mismatch vs bf16 ref"

    # Looser check against the full-f32 reference (bf16 input rounding).
    ref = _reference_f32(x, w1, b1, w2, b2)
    assert jnp.allclose(out, ref, atol=1e-2, rtol=1e-2), "mismatch vs f32 ref"

    print("KERNEL_OK")
</pallas_src>

<mosaic_0001>
module attributes {stable_mosaic.version = 11 : i64} {
  func.func @_ffn_kernel(%arg0: i32, %arg1: memref<16x32xbf16, #tpu.memory_space<vmem>>, %arg2: memref<32x128xbf16, #tpu.memory_space<vmem>>, %arg3: memref<1x128xf32, #tpu.memory_space<vmem>>, %arg4: memref<128x32xbf16, #tpu.memory_space<vmem>>, %arg5: memref<1x32xf32, #tpu.memory_space<vmem>>, %arg6: memref<16x32xf32, #tpu.memory_space<vmem>>) attributes {dimension_semantics = [#tpu.dimension_semantics<parallel>], iteration_bounds = array<i64: 1>, scalar_prefetch = 0 : i64, scratch_operands = 0 : i64, tpu.core_type = #tpu.core_type<tc>, window_params = [{transform_indices = @transform_0, window_bounds = array<i64: 16, 32>}, {pipeline_mode = #tpu.pipeline_mode<synchronous>, transform_indices = @transform_1, window_bounds = array<i64: 32, 128>}, {pipeline_mode = #tpu.pipeline_mode<synchronous>, transform_indices = @transform_2, window_bounds = array<i64: 1, 128>}, {pipeline_mode = #tpu.pipeline_mode<synchronous>, transform_indices = @transform_3, window_bounds = array<i64: 128, 32>}, {pipeline_mode = #tpu.pipeline_mode<synchronous>, transform_indices = @transform_4, window_bounds = array<i64: 1, 32>}, {transform_indices = @transform_5, window_bounds = array<i64: 16, 32>}]} {
    %c0 = arith.constant 0 : index
    %c0_0 = arith.constant 0 : index
    %0 = vector.load %arg1[%c0, %c0_0] : memref<16x32xbf16, #tpu.memory_space<vmem>>, vector<16x32xbf16>
    %c0_1 = arith.constant 0 : index
    %c0_2 = arith.constant 0 : index
    %1 = vector.load %arg2[%c0_1, %c0_2] : memref<32x128xbf16, #tpu.memory_space<vmem>>, vector<32x128xbf16>
    %cst = arith.constant dense<0.000000e+00> : vector<16x128xf32>
    %2 = tpu.matmul %0, %1, %cst {dimension_numbers = #tpu.dot_dimension_numbers<[1], [0], [0], [1], [0, 0, 1, 1], [], []>} : vector<16x32xbf16>, vector<32x128xbf16>, vector<16x128xf32> -> vector<16x128xf32>
    %c0_3 = arith.constant 0 : index
    %c0_4 = arith.constant 0 : index
    %3 = vector.load %arg3[%c0_3, %c0_4] : memref<1x128xf32, #tpu.memory_space<vmem>>, vector<1x128xf32>
    %4 = vector.broadcast %3 : vector<1x128xf32> to vector<16x128xf32>
    %5 = arith.addf %2, %4 : vector<16x128xf32>
    %6 = arith.mulf %5, %5 : vector<16x128xf32>
    %7 = arith.mulf %5, %6 : vector<16x128xf32>
    %cst_5 = arith.constant 4.471500e-02 : f32
    %8 = vector.broadcast %cst_5 : f32 to vector<16x128xf32>
    %9 = arith.mulf %8, %7 : vector<16x128xf32>
    %10 = arith.addf %5, %9 : vector<16x128xf32>
    %cst_6 = arith.constant 0.797884583 : f32
    %11 = vector.broadcast %cst_6 : f32 to vector<16x128xf32>
    %12 = arith.mulf %11, %10 : vector<16x128xf32>
    %13 = math.tanh %12 : vector<16x128xf32>
    %cst_7 = arith.constant 1.000000e+00 : f32
    %14 = vector.broadcast %cst_7 : f32 to vector<16x128xf32>
    %15 = arith.addf %14, %13 : vector<16x128xf32>
    %cst_8 = arith.constant 5.000000e-01 : f32
    %16 = vector.broadcast %cst_8 : f32 to vector<16x128xf32>
    %17 = arith.mulf %16, %15 : vector<16x128xf32>
    %18 = arith.mulf %5, %17 : vector<16x128xf32>
    %19 = arith.truncf %18 : vector<16x128xf32> to vector<16x128xbf16>
    %c0_9 = arith.constant 0 : index
    %c0_10 = arith.constant 0 : index
    %20 = vector.load %arg4[%c0_9, %c0_10] : memref<128x32xbf16, #tpu.memory_space<vmem>>, vector<128x32xbf16>
    %cst_11 = arith.constant dense<0.000000e+00> : vector<16x32xf32>
    %21 = tpu.matmul %19, %20, %cst_11 {dimension_numbers = #tpu.dot_dimension_numbers<[1], [0], [0], [1], [0, 0, 1, 1], [], []>} : vector<16x128xbf16>, vector<128x32xbf16>, vector<16x32xf32> -> vector<16x32xf32>
    %c0_12 = arith.constant 0 : index
    %c0_13 = arith.constant 0 : index
    %22 = vector.load %arg5[%c0_12, %c0_13] : memref<1x32xf32, #tpu.memory_space<vmem>>, vector<1x32xf32>
    %23 = vector.broadcast %22 : vector<1x32xf32> to vector<16x32xf32>
    %24 = arith.addf %21, %23 : vector<16x32xf32>
    %c0_14 = arith.constant 0 : index
    %c0_15 = arith.constant 0 : index
    %25 = vector.load %arg6[%c0_14, %c0_15] : memref<16x32xf32, #tpu.memory_space<vmem>>, vector<16x32xf32>
    tpu.vector_store %arg6[%c0_14, %c0_15], %24 {strides = array<i32>} : memref<16x32xf32, #tpu.memory_space<vmem>>, vector<16x32xf32>,
    return
  }
  func.func @transform_0(%arg0: i32) -> (i32, i32) {
    %c0_i32 = arith.constant 0 : i32
    %c0_i32_0 = arith.constant 0 : i32
    return %arg0, %c0_i32 : i32, i32
  }
  func.func @transform_1(%arg0: i32) -> (i32, i32) {
    %c0_i32 = arith.constant 0 : i32
    %c0_i32_0 = arith.constant 0 : i32
    %c0_i32_1 = arith.constant 0 : i32
    return %c0_i32, %c0_i32_0 : i32, i32
  }
  func.func @transform_2(%arg0: i32) -> (i32, i32) {
    %c0_i32 = arith.constant 0 : i32
    %c0_i32_0 = arith.constant 0 : i32
    %c0_i32_1 = arith.constant 0 : i32
    return %c0_i32, %c0_i32_0 : i32, i32
  }
  func.func @transform_3(%arg0: i32) -> (i32, i32) {
    %c0_i32 = arith.constant 0 : i32
    %c0_i32_0 = arith.constant 0 : i32
    %c0_i32_1 = arith.constant 0 : i32
    return %c0_i32, %c0_i32_0 : i32, i32
  }
  func.func @transform_4(%arg0: i32) -> (i32, i32) {
    %c0_i32 = arith.constant 0 : i32
    %c0_i32_0 = arith.constant 0 : i32
    %c0_i32_1 = arith.constant 0 : i32
    return %c0_i32, %c0_i32_0 : i32, i32
  }
  func.func @transform_5(%arg0: i32) -> (i32, i32) {
    %c0_i32 = arith.constant 0 : i32
    %c0_i32_0 = arith.constant 0 : i32
    return %arg0, %c0_i32 : i32, i32
  }
}

</mosaic_0001>

<bundles_post_ra>
// kernel: tpu_custom_call.1
= control target key start
LH: loop header
LB: loop body
LE: loop exit
PB: predicated region body
PF: predicated region fallthrough
CT: control target
= control target key end

     0   :  { %v342_v1 = vmov 0.0   ;;  %vm343_vm0 = vmmov 0   ;;  %vm52_vm1 = vcmask 261120   ;;  %s422_s0 = inlined_call_operand.vmem [shape: bf16[16,32], index: 0, kind: input, shape index: {}]   ;;  %s423_s1 = inlined_call_operand.vmem [shape: bf16[32,128], index: 1, kind: input, shape index: {}]   ;;  %s424_s2 = inlined_call_operand.vmem [shape: f32[1,128], index: 2, kind: input, shape index: {}]   ;;  %s425_s3 = inlined_call_operand.vmem [shape: bf16[128,32], index: 3, kind: input, shape index: {}]   ;;  %s426_s4 = inlined_call_operand.vmem [shape: f32[1,32], index: 4, kind: input, shape index: {}]   ;;  %s427_s5 = inlined_call_operand.hbm [shape: f32[16,32], index: 5, kind: output, shape index: {}]  }
   0x1   :  { %v305_v0 = vld [vmem:[%s423_s1 + $0x8] sm:$0xff]   ;;  %272 = vmatprep.subr.bf16.mxu0 %v342_v1  ;;  %280 = vmatprep.subr.bf16.mxu1 %v342_v1  ;;  %v306_v2 = vld [vmem:[%s423_s1] sm:$0xff]  }
   0x2   :  { %273 = vmatpush3.bf16.msra.mxu0 %v305_v0  ;;  %276 = vmatprep.mubr.msk.bf16.mxu0 %vm343_vm0, %v342_v1  ;;  %v307_v3 = vld [vmem:[%s422_s0] sm:$0xff]  }
   0x3   :  { %274 = vmatprep.subr.bf16.mxu0 %v342_v1  ;;  %296 = vmatprep.mubr.msk.bf16.mxu1 %vm343_vm0, %v342_v1 }
   0x6   :  { %275 = vmatpush3.bf16.msra.mxu0 %v306_v2 }
   0x7   :  { %10 = vsyncpa [#allocation3], 0  ;;  %v308_v4 = vld [vmem:[%s425_s3 + $0x38] sm:$0xff]   ;;  %v309_v5 = vld [vmem:[%s425_s3 + $0x30] sm:$0xff]   ;;  %s344_s15 = smov [#allocation2]  }
   0x8   :  { %281 = vmatpush3.bf16.msra.mxu1 %v308_v4  ;;  %v310_v6 = vld [vmem:[%s425_s3 + $0x28] sm:$0xff]   ;;  %v311_v7 = vld [vmem:[%s425_s3 + $0x20] sm:$0xff]   ;;  %v312_v8 = vld [vmem:[%s425_s3 + $0x18] sm:$0xff]   ;;  %s235_s16 = sshll.u32 %s344_s15, 4  ;;  %s236_s16 = int_to_ptr.vmem [resolvable:$true] %s235_s16 }
   0x9   :  { %277 = vmatmul.mubr.msk.bf16.vlgmr.msra.gmra.mxu0 %vm52_vm1, %v307_v3  ;;  %282 = vmatprep.subr.bf16.mxu1 %v342_v1  ;;  %v313_v9 = vld [vmem:[%s425_s3 + $0x10] sm:$0xff]   ;;  %v314_v10 = vld [vmem:[%s425_s3 + $0x8] sm:$0xff]   ;;  %v315_v11 = vld [vmem:[%s425_s3] sm:$0xff]   ;;  %s320_s17 = scalar_lea.vmem %s236_s16, 256  ;;  %p325_p1 = scmp.lt.s32.totalorder %s236_s16, %s236_s16 }
   0xa   :  { %v246_v12 = vld [vmem:[%s424_s2] ss:$0 sm:$0xff]  ;;  %p321_p0 = scmp.ne.s32.totalorder %s236_s16, %s320_s17  ;;  %p326_p2 = scmp.lt.s32.totalorder %s320_s17, %s320_s17 }
   0xb   :  { %v251_v38 = vld [vmem:[%s426_s4] ss:$0 sm:$0xff] }
   0xc   :  { %283 = vmatpush3.bf16.msra.mxu1 %v309_v5  ;;  %p327_p3 = por %p326_p2, %p325_p1 }
   0xd   :  { %284 = vmatprep.subr.bf16.mxu1 %v342_v1 }
   0xe   :  { %p328_p4 = pnand %p327_p3, %p321_p0 }
  0x10   :  { %285 = vmatpush3.bf16.msra.mxu1 %v310_v6 }
  0x11   :  { %286 = vmatprep.subr.bf16.mxu1 %v342_v1 }
  0x14   :  { %287 = vmatpush3.bf16.msra.mxu1 %v311_v7 }
  0x15   :  { %288 = vmatprep.subr.bf16.mxu1 %v342_v1 }
  0x18   :  { %289 = vmatpush3.bf16.msra.mxu1 %v312_v8 }
  0x19   :  { %290 = vmatprep.subr.bf16.mxu1 %v342_v1 }
  0x1c   :  { %291 = vmatpush3.bf16.msra.mxu1 %v313_v9 }
  0x1d   :  { %292 = vmatprep.subr.bf16.mxu1 %v342_v1 }
  0x20   :  { %293 = vmatpush3.bf16.msra.mxu1 %v314_v10 }
  0x21   :  { %294 = vmatprep.subr.bf16.mxu1 %v342_v1 }
  0x24   :  { %295 = vmatpush3.bf16.msra.mxu1 %v315_v11 }
  0xc9   :  { %v90_v13 = vpop.f32.mrf.mxu0 }
  0xca   :  { %v91_v14 = vadd.f32 %v246_v12, %v90_v13 }
  0xcb   :  { %v278_v15 = vpop.f32.mrf.mxu0 }
  0xcc   :  { %v97_v16 = vmul.f32 %v91_v14, %v91_v14 }
  0xcd   :  { %v93_v17 = vpop.f32.mrf.mxu0 }
  0xce   :  { %v99_v18 = vmul.f32 %v97_v16, %v91_v14  ;;  %v94_v19 = vadd.f32 %v246_v12, %v93_v17 }
  0xcf   :  { %v279_v20 = vpop.f32.mrf.mxu0 }
  0xd0   :  { %v101_v21 = vmul.f32 0.044715, %v99_v18  ;;  %v98_v22 = vmul.f32 %v94_v19, %v94_v19 }
  0xd2   :  { %v103_v23 = vadd.f32 %v101_v21, %v91_v14  ;;  %v100_v24 = vmul.f32 %v98_v22, %v94_v19 }
  0xd4   :  { %v105_v25 = vmul.f32 0.7978846, %v103_v23  ;;  %v102_v26 = vmul.f32 0.044715, %v100_v24 }
  0xd6   :  { %316 = vtanh.f32 %v105_v25  ;;  %v104_v27 = vadd.f32 %v102_v26, %v94_v19 }
  0xd8   :  { %v106_v28 = vmul.f32 0.7978846, %v104_v27 }
  0xda   :  { %318 = vtanh.f32 %v106_v28 }
  0xe3   :  { %v317_v29 = vpop.eup %316 }
  0xe4   :  { %v109_v30 = vadd.f32 1.0, %v317_v29 }
  0xe6   :  { %v111_v33 = vmul.f32 0.5, %v109_v30 }
  0xe7   :  { %v319_v31 = vpop.eup %318 }
  0xe8   :  { %v110_v32 = vadd.f32 1.0, %v319_v31  ;;  %v113_v35 = vmul.f32 %v111_v33, %v91_v14 }
  0xea   :  { %v112_v34 = vmul.f32 0.5, %v110_v32 }
  0xec   :  { %v114_v36 = vmul.f32 %v112_v34, %v94_v19 }
  0xee   :  { %v115_v37 = vpack.c.bf16 %v114_v36, %v113_v35 }
  0xf0   :  { %297 = vmatmul.mubr.bf16.vlgmr.msra.gmra.mxu1 %v115_v37 }
 0x1b0   :  { %v221_v39 = vpop.f32.mrf.mxu1 }
 0x1b1   :  { %v222_v40 = vadd.f32 %v251_v38, %v221_v39 }
 0x1b2   :  { %v298_v41 = vpop.f32.mrf.mxu1 }
 0x1b3   :  { %228 = vst.msk [vmem:[#allocation2] sm:$0xff] %vm52_vm1, %v222_v40 }
 0x1b4   :  { %v224_v42 = vpop.f32.mrf.mxu1 }
 0x1b5   :  { %v225_v43 = vadd.f32 %v251_v38, %v224_v42 }
 0x1b6   :  { %v299_v44 = vpop.f32.mrf.mxu1 }
 0x1b7   :  { %229 = vst.msk [vmem:[#allocation2 + $0x8] sm:$0xff] %vm52_vm1, %v225_v43 }
 0x1b8   :  { %331 = shalt.err (!%p328_p4)
}
 0x1b9   :  { %s345_s4 = smov 128   ;;  %s346_s18 = smov 8  }
 0x1ba   :  { %241 = dma.vmem_to_hbm [thread:$0]  %s236_s16, 256, %s427_s5, [#allocation3], %s345_s4, %s345_s4, %s346_s18  }
 0x1bb   :  { %340 = dma.done.wait [#allocation3], 256  }
 0x1bc   :  { %341 = vsyncadd [#allocation3], 4294967040 }
 0x1bd   :  { %245 = vsyncpa [#allocation3], 1 }

</bundles_post_ra>
